<compile_context>
chip_gen: v7x
topology: tpu7x:2x2x1
jax: 0.10.0
libtpu: 0.0.40
codegen_flags: <defaults>
</compile_context>

<pallas_src>
import functools

import jax
import jax.numpy as jnp
import numpy as np
from jax.experimental import pallas as pl
from jax.experimental.pallas import tpu as pltpu


def _round_up(x, m):
    return ((x + m - 1) // m) * m


def _vmem_cap_bytes():
    """Physical VMEM per TensorCore; conservative fallback (v7x = 64 MiB)."""
    try:
        return int(pltpu.get_tpu_info().vmem_capacity_bytes)
    except Exception:
        return 64 * 1024 * 1024


def _triplet_block_kernel(x_ref, xt_ref, sqr_ref, labr_ref, sqc_ref, labc_ref,
                          hinge_ref, *, margin):
    """One TM-row block of the batch-hard triplet loss.

    x_ref:     (TM, D)   L2-normalised rows of this block (native input dtype)
    xt_ref:    (D, NC)   L2-normalised features, transposed (VMEM-resident RHS)
    sqr_ref:   (TM, 1)   ||xn_i||^2 per row (f32)
    labr_ref:  (TM, 1)   int32 label per row
    sqc_ref:   (1, NC)   ||xn_j||^2 per column (1e30 for padded columns)
    labc_ref:  (1, NC)   int32 label per column (sentinel for padded columns)
    hinge_ref: (TM, 1)   out: per-row relu(dist_ap - dist_an + margin)
    """
    # Native-dtype MXU feed; f32 accumulation via preferred_element_type.
    g = jnp.dot(x_ref[...], xt_ref[...],
                preferred_element_type=jnp.float32)          # (TM, NC)

    sq_r = sqr_ref[...]                                      # (TM, 1)
    sq_c = sqc_ref[...]                                      # (1, NC)
    same = labr_ref[...] == labc_ref[...]                    # (TM, NC), diag incl.

    # dist2[i,j] = sq_r[i] + m[i,j]; mine on m, add the row-constant sq_r after
    # the reduction (monotone, so mined values are bit-identical).
    m = sq_c - 2.0 * g
    ap = jnp.max(jnp.where(same, m, jnp.float32(-1e30)), axis=1, keepdims=True)
    an = jnp.min(jnp.where(same, jnp.float32(1e30), m), axis=1, keepdims=True)

    dist_ap = jnp.sqrt(jnp.maximum(sq_r + ap, 1e-12))
    dist_an = jnp.sqrt(jnp.maximum(sq_r + an, 1e-12))
    hinge_ref[...] = jnp.maximum(dist_ap - dist_an + jnp.float32(margin), 0.0)


def triplet_loss_semhard(inputs, targets, margin=0.3, block_rows=256):
    """inputs: (n, feat_dim) float, targets: (n,) int labels -> scalar f32 loss."""
    n, d = inputs.shape
    sub = 8 if jnp.dtype(inputs.dtype).itemsize >= 4 else 16

    # Row tiling: ceil(n / block_rows) equal blocks, sublane-aligned; columns
    # padded to a lane-dense multiple of 128; features padded to 128 lanes.
    nblocks = -(-n // block_rows)
    tm = _round_up(-(-n // nblocks), sub)
    n_rows = tm * nblocks
    n_cols = _round_up(n, 128)
    d_pad = _round_up(d, 128)

    # O(n*d) row normalisation in f32 (matches x / (||x||_2 + 1e-12)); cast back
    # to the input dtype so bf16 inputs keep a full-rate bf16 MXU feed.
    x32 = inputs.astype(jnp.float32)
    norm = jnp.sqrt(jnp.sum(x32 * x32, axis=1, keepdims=True))
    xn32 = x32 / (norm + 1e-12)
    sq = jnp.sum(xn32 * xn32, axis=1)                 # ||xn_i||^2 (~1.0)
    xn = xn32.astype(inputs.dtype)

    lab = targets.astype(jnp.int32)
    sentinel = jnp.min(lab) - 1                       # label no real row can match

    x_p = jnp.pad(xn, ((0, n_rows - n), (0, d_pad - d)))
    x_t = jnp.transpose(jnp.pad(xn, ((0, n_cols - n), (0, d_pad - d))))  # (d_pad, n_cols)

    sq_r = jnp.pad(sq, (0, n_rows - n)).reshape(n_rows, 1)
    lab_r = jnp.concatenate(
        [lab, jnp.broadcast_to(sentinel, (n_rows - n,))]).reshape(n_rows, 1)
    # Padded columns: huge squared norm (never wins the negative min) and the
    # sentinel label (never enters a real row's positive mask).
    sq_c = jnp.pad(sq, (0, n_cols - n), constant_values=1e30).reshape(1, n_cols)
    lab_c = jnp.concatenate(
        [lab, jnp.broadcast_to(sentinel, (n_cols - n,))]).reshape(1, n_cols)

    # VMEM budget: resident RHS (x2 buffers) + per-step row block (x2) + column
    # stats (x2) + ~5 live (TM, NC) f32 temporaries + small per-row tiles.
    isz = jnp.dtype(inputs.dtype).itemsize
    vmem_needed = (2 * d_pad * n_cols * isz
                   + 2 * tm * d_pad * isz
                   + 5 * tm * n_cols * 4
                   + 2 * 2 * n_cols * 4
                   + 2 * 3 * tm * 4)
    vmem_limit = min(max(int(1.25 * vmem_needed), 32 * 1024 * 1024),
                     int(0.9 * _vmem_cap_bytes()))

    kernel = functools.partial(_triplet_block_kernel, margin=float(margin))
    hinge_rows = pl.pallas_call(
        kernel,
        out_shape=jax.ShapeDtypeStruct((n_rows, 1), jnp.float32),
        grid=(nblocks,),
        in_specs=[
            pl.BlockSpec((tm, d_pad), lambda i: (i, 0)),       # pipelined row block
            pl.BlockSpec((d_pad, n_cols), lambda i: (0, 0)),   # RHS, VMEM-resident
            pl.BlockSpec((tm, 1), lambda i: (i, 0)),           # sq_r
            pl.BlockSpec((tm, 1), lambda i: (i, 0)),           # lab_r
            pl.BlockSpec((1, n_cols), lambda i: (0, 0)),       # sq_c, resident
            pl.BlockSpec((1, n_cols), lambda i: (0, 0)),       # lab_c, resident
        ],
        out_specs=pl.BlockSpec((tm, 1), lambda i: (i, 0)),
        compiler_params=pltpu.CompilerParams(
            dimension_semantics=("parallel",),
            vmem_limit_bytes=vmem_limit),
    )(x_p, x_t, sq_r, lab_r, sq_c, lab_c)

    # Degenerate-batch gate straight from the labels (no kernel work):
    #   has_pos: some class has >= 2 members; has_neg: more than one class.
    srt = jnp.sort(lab)
    has_pos = jnp.any(srt[1:] == srt[:-1])
    has_neg = jnp.any(lab != lab[0])

    loss = jnp.sum(hinge_rows[:n, 0]) / jnp.float32(n)
    # TODO(synk): mutual_flag=True (also returning the full dist matrix) and the
    # logger warning side-effect are not implemented; default forward path only.
    return jnp.where(jnp.logical_and(has_pos, has_neg), loss, jnp.float32(0.0))


def triplet_loss_ref(inputs, targets, margin=0.3):
    """Float64 NumPy reference mirroring the PyTorch module."""
    x = np.asarray(inputs, dtype=np.float64)
    t = np.asarray(targets)
    n = x.shape[0]
    x = x / (np.linalg.norm(x, axis=1, keepdims=True) + 1e-12)
    sq = np.sum(x * x, axis=1, keepdims=True)
    dist = sq + sq.T - 2.0 * (x @ x.T)
    dist = np.sqrt(np.clip(dist, 1e-12, None))
    mask = t[:, None] == t[None, :]
    eye = np.eye(n, dtype=bool)
    if not (mask & ~eye).any() or not (~mask).any():
        return 0.0
    dist_ap = np.max(np.where(mask, dist, -np.inf), axis=1)
    dist_an = np.min(np.where(mask, np.inf, dist), axis=1)
    return float(np.mean(np.maximum(dist_ap - dist_an + margin, 0.0)))


if __name__ == "__main__":
    key = jax.random.PRNGKey(0)
    k1, k2, k3 = jax.random.split(key, 3)

    # Test 1: small batch, single row block (grid=(1,)), column padding 8 -> 128.
    n1, d1 = 8, 32
    x1 = jax.random.normal(k1, (n1, d1), dtype=jnp.float32)
    t1 = jnp.array([0, 0, 1, 1, 0, 2, 2, 1], dtype=jnp.int32)
    loss1 = jax.block_until_ready(triplet_loss_semhard(x1, t1, margin=0.3))
    ref1 = triplet_loss_ref(x1, t1, margin=0.3)
    assert abs(float(loss1) - ref1) < 1e-4, (float(loss1), ref1)

    # Test 2: multi-block grid with row padding (300 -> 2x152), lane-dense column
    # padding (300 -> 384) and feature padding (96 -> 128) exercised.
    n2, d2 = 300, 96
    x2 = jax.random.normal(k2, (n2, d2), dtype=jnp.float32)
    t2 = jax.random.randint(k3, (n2,), 0, 6, dtype=jnp.int32)
    loss2 = jax.block_until_ready(triplet_loss_semhard(x2, t2, margin=0.3))
    ref2 = triplet_loss_ref(x2, t2, margin=0.3)
    assert abs(float(loss2) - ref2) < 1e-3, (float(loss2), ref2)

    print("KERNEL_OK")
</pallas_src>

<mosaic_0001>
module attributes {stable_mosaic.version = 11 : i64} {
  func.func @_triplet_block_kernel(%arg0: i32, %arg1: memref<8x128xf32, #tpu.memory_space<vmem>>, %arg2: memref<128x128xf32, #tpu.memory_space<vmem>>, %arg3: memref<8x1xf32, #tpu.memory_space<vmem>>, %arg4: memref<8x1xi32, #tpu.memory_space<vmem>>, %arg5: memref<1x128xf32, #tpu.memory_space<vmem>>, %arg6: memref<1x128xi32, #tpu.memory_space<vmem>>, %arg7: memref<8x1xf32, #tpu.memory_space<vmem>>) attributes {dimension_semantics = [#tpu.dimension_semantics<parallel>], iteration_bounds = array<i64: 1>, scalar_prefetch = 0 : i64, scratch_operands = 0 : i64, tpu.core_type = #tpu.core_type<tc>, window_params = [{transform_indices = @transform_0, window_bounds = array<i64: 8, 128>}, {pipeline_mode = #tpu.pipeline_mode<synchronous>, transform_indices = @transform_1, window_bounds = array<i64: 128, 128>}, {transform_indices = @transform_2, window_bounds = array<i64: 8, 1>}, {transform_indices = @transform_3, window_bounds = array<i64: 8, 1>}, {pipeline_mode = #tpu.pipeline_mode<synchronous>, transform_indices = @transform_4, window_bounds = array<i64: 1, 128>}, {pipeline_mode = #tpu.pipeline_mode<synchronous>, transform_indices = @transform_5, window_bounds = array<i64: 1, 128>}, {transform_indices = @transform_6, window_bounds = array<i64: 8, 1>}]} {
    %c0 = arith.constant 0 : index
    %c0_0 = arith.constant 0 : index
    %0 = vector.load %arg1[%c0, %c0_0] : memref<8x128xf32, #tpu.memory_space<vmem>>, vector<8x128xf32>
    %c0_1 = arith.constant 0 : index
    %c0_2 = arith.constant 0 : index
    %1 = vector.load %arg2[%c0_1, %c0_2] : memref<128x128xf32, #tpu.memory_space<vmem>>, vector<128x128xf32>
    %cst = arith.constant dense<0.000000e+00> : vector<8x128xf32>
    %2 = tpu.matmul %0, %1, %cst {dimension_numbers = #tpu.dot_dimension_numbers<[1], [0], [0], [1], [0, 0, 1, 1], [], []>} : vector<8x128xf32>, vector<128x128xf32>, vector<8x128xf32> -> vector<8x128xf32>
    %c0_3 = arith.constant 0 : index
    %c0_4 = arith.constant 0 : index
    %3 = vector.load %arg3[%c0_3, %c0_4] : memref<8x1xf32, #tpu.memory_space<vmem>>, vector<8x1xf32>
    %c0_5 = arith.constant 0 : index
    %c0_6 = arith.constant 0 : index
    %4 = vector.load %arg5[%c0_5, %c0_6] : memref<1x128xf32, #tpu.memory_space<vmem>>, vector<1x128xf32>
    %c0_7 = arith.constant 0 : index
    %c0_8 = arith.constant 0 : index
    %5 = vector.load %arg4[%c0_7, %c0_8] : memref<8x1xi32, #tpu.memory_space<vmem>>, vector<8x1xi32>
    %c0_9 = arith.constant 0 : index
    %c0_10 = arith.constant 0 : index
    %6 = vector.load %arg6[%c0_9, %c0_10] : memref<1x128xi32, #tpu.memory_space<vmem>>, vector<1x128xi32>
    %7 = vector.broadcast %5 : vector<8x1xi32> to vector<8x128xi32>
    %8 = vector.broadcast %6 : vector<1x128xi32> to vector<8x128xi32>
    %9 = arith.cmpi eq, %7, %8 : vector<8x128xi32>
    %cst_11 = arith.constant 2.000000e+00 : f32
    %10 = vector.broadcast %cst_11 : f32 to vector<8x128xf32>
    %11 = arith.mulf %10, %2 : vector<8x128xf32>
    %12 = vector.broadcast %4 : vector<1x128xf32> to vector<8x128xf32>
    %13 = arith.subf %12, %11 : vector<8x128xf32>
    %cst_12 = arith.constant -1.000000e+30 : f32
    %14 = vector.broadcast %cst_12 : f32 to vector<8x128xf32>
    %15 = arith.select %9, %13, %14 : vector<8x128xi1>, vector<8x128xf32>
    %cst_13 = arith.constant dense<0xFF800000> : vector<8xf32>
    %16 = vector.multi_reduction <maximumf>, %15, %cst_13 [1] : vector<8x128xf32> to vector<8xf32>
    %17 = vector.shape_cast %16 : vector<8xf32> to vector<8x1xf32>
    %cst_14 = arith.constant 1.000000e+30 : f32
    %18 = vector.broadcast %cst_14 : f32 to vector<8x128xf32>
    %19 = arith.select %9, %18, %13 : vector<8x128xi1>, vector<8x128xf32>
    %cst_15 = arith.constant dense<0x7F800000> : vector<8xf32>
    %20 = vector.multi_reduction <minimumf>, %19, %cst_15 [1] : vector<8x128xf32> to vector<8xf32>
    %21 = vector.shape_cast %20 : vector<8xf32> to vector<8x1xf32>
    %22 = arith.addf %3, %17 : vector<8x1xf32>
    %cst_16 = arith.constant 9.99999996E-13 : f32
    %23 = vector.broadcast %cst_16 : f32 to vector<8x1xf32>
    %24 = arith.maximumf %22, %23 : vector<8x1xf32>
    %25 = math.sqrt %24 : vector<8x1xf32>
    %26 = arith.addf %3, %21 : vector<8x1xf32>
    %cst_17 = arith.constant 9.99999996E-13 : f32
    %27 = vector.broadcast %cst_17 : f32 to vector<8x1xf32>
    %28 = arith.maximumf %26, %27 : vector<8x1xf32>
    %29 = math.sqrt %28 : vector<8x1xf32>
    %30 = arith.subf %25, %29 : vector<8x1xf32>
    %cst_18 = arith.constant 3.000000e-01 : f32
    %31 = vector.broadcast %cst_18 : f32 to vector<8x1xf32>
    %32 = arith.addf %30, %31 : vector<8x1xf32>
    %cst_19 = arith.constant 0.000000e+00 : f32
    %33 = vector.broadcast %cst_19 : f32 to vector<8x1xf32>
    %34 = arith.maximumf %32, %33 : vector<8x1xf32>
    %c0_20 = arith.constant 0 : index
    %c0_21 = arith.constant 0 : index
    %35 = vector.load %arg7[%c0_20, %c0_21] : memref<8x1xf32, #tpu.memory_space<vmem>>, vector<8x1xf32>
    tpu.vector_store %arg7[%c0_20, %c0_21], %34 {strides = array<i32>} : memref<8x1xf32, #tpu.memory_space<vmem>>, vector<8x1xf32>,
    return
  }
  func.func @transform_0(%arg0: i32) -> (i32, i32) {
    %c0_i32 = arith.constant 0 : i32
    %c0_i32_0 = arith.constant 0 : i32
    return %arg0, %c0_i32 : i32, i32
  }
  func.func @transform_1(%arg0: i32) -> (i32, i32) {
    %c0_i32 = arith.constant 0 : i32
    %c0_i32_0 = arith.constant 0 : i32
    %c0_i32_1 = arith.constant 0 : i32
    return %c0_i32, %c0_i32_0 : i32, i32
  }
  func.func @transform_2(%arg0: i32) -> (i32, i32) {
    %c0_i32 = arith.constant 0 : i32
    %c0_i32_0 = arith.constant 0 : i32
    return %arg0, %c0_i32 : i32, i32
  }
  func.func @transform_3(%arg0: i32) -> (i32, i32) {
    %c0_i32 = arith.constant 0 : i32
    %c0_i32_0 = arith.constant 0 : i32
    return %arg0, %c0_i32 : i32, i32
  }
  func.func @transform_4(%arg0: i32) -> (i32, i32) {
    %c0_i32 = arith.constant 0 : i32
    %c0_i32_0 = arith.constant 0 : i32
    %c0_i32_1 = arith.constant 0 : i32
    return %c0_i32, %c0_i32_0 : i32, i32
  }
  func.func @transform_5(%arg0: i32) -> (i32, i32) {
    %c0_i32 = arith.constant 0 : i32
    %c0_i32_0 = arith.constant 0 : i32
    %c0_i32_1 = arith.constant 0 : i32
    return %c0_i32, %c0_i32_0 : i32, i32
  }
  func.func @transform_6(%arg0: i32) -> (i32, i32) {
    %c0_i32 = arith.constant 0 : i32
    %c0_i32_0 = arith.constant 0 : i32
    return %arg0, %c0_i32 : i32, i32
  }
}

</mosaic_0001>

<bundles_post_ra>
// kernel: tpu_custom_call.1
= control target key start
LH: loop header
LB: loop body
LE: loop exit
PB: predicated region body
PF: predicated region fallthrough
CT: control target
= control target key end

     0   :  { %11 = vsyncpa [#allocation3], 0  ;;  %s292_s21 = smov [#allocation2]   ;;  %s364_s0 = inlined_call_operand.vmem [shape: f32[8,128], index: 0, kind: input, shape index: {}]   ;;  %s365_s1 = inlined_call_operand.hbm [shape: f32[128,128], index: 1, kind: input, shape index: {}]   ;;  %s366_s2 = inlined_call_operand.vmem [shape: f32[8,1], index: 2, kind: input, shape index: {}]   ;;  %s367_s3 = inlined_call_operand.vmem [shape: s32[8,1], index: 3, kind: input, shape index: {}]   ;;  %s368_s4 = inlined_call_operand.vmem [shape: f32[1,128], index: 4, kind: input, shape index: {}]   ;;  %s369_s5 = inlined_call_operand.vmem [shape: s32[1,128], index: 5, kind: input, shape index: {}]   ;;  %s370_s6 = inlined_call_operand.vmem [shape: f32[8,1], index: 6, kind: output, shape index: {}]  }
   0x1   :  { %s19_s22 = sshll.u32 %s292_s21, 4  ;;  %s268_s25 = scalar_lea.hbm %s365_s1, 2048  ;;  %s20_s22 = int_to_ptr.vmem [resolvable:$true] %s19_s22 }
   0x2   :  { %p269_p0 = scmp.ne.s32.totalorder %s365_s1, %s268_s25  ;;  %p272_p1 = scmp.lt.u32.totalorder %s268_s25, %s365_s1 }
   0x4   :  { %p274_p2 = pnand %p272_p1, %p269_p0 }
   0x6   :  { %277 = shalt.err (!%p274_p2)
}
   0x7   :  { %s278_s30 = scalar_lea.vmem %s20_s22, 2048  ;;  %p283_p4 = scmp.lt.s32.totalorder %s20_s22, %s20_s22 }
   0x8   :  { %p279_p3 = scmp.ne.s32.totalorder %s20_s22, %s278_s30  ;;  %p284_p5 = scmp.lt.s32.totalorder %s278_s30, %s278_s30 }
   0xa   :  { %p285_p6 = por %p284_p5, %p283_p4 }
   0xc   :  { %p286_p7 = pnand %p285_p6, %p279_p3 }
   0xe   :  { %289 = shalt.err (!%p286_p7)
}
   0xf   :  { %s293_s7 = smov 128   ;;  %s294_s8 = smov 8  }
  0x10   :  { %25 = dma.hbm_to_vmem [thread:$0]  %s365_s1, 2048, %s20_s22, [#allocation3], %s293_s7, %s293_s7, %s294_s8  }
  0x11   :  { %290 = dma.done.wait [#allocation3], 2048  }
  0x12   :  { %291 = vsyncadd [#allocation3], 4294965248  ;;  %v295_v0 = vmov 0.0|0.0   ;;  %vm296_vm0 = vmmov 0   ;;  %v297_v1 = vmov 0.0   ;;  %v298_v2 = vmov 0  }
  0x13   :  { %232 = vmatprep.subr.bf16.mxu0 %v295_v0  ;;  %229 = vmatprep.mubr.msk.f32.mxu0 %vm296_vm0, %v297_v1  ;;  %v38_v3 = vld [vmem:[#allocation2] sm:$0xff]  ;;  %v39_v4 = vld [vmem:[#allocation2 + $0x8] sm:$0xff]  ;;  %v40_v5 = vld [vmem:[#allocation2 + $0x10] sm:$0xff]  ;;  %vm171_vm6 = vcmask 7168  }
  0x14   :  { %263 = vset.pattern.permute.xlu0 %v298_v2  ;;  %v233_v6 = vpack.c.bf16 %v39_v4, %v38_v3  ;;  %v41_v7 = vld [vmem:[#allocation2 + $0x18] sm:$0xff]  ;;  %v42_v9 = vld [vmem:[#allocation2 + $0x20] sm:$0xff]  ;;  %v43_v10 = vld [vmem:[#allocation2 + $0x28] sm:$0xff] }
  0x15   :  { %v236_v8 = vpack.c.bf16 %v41_v7, %v40_v5  ;;  %v126_v11 = vld [vmem:[%s367_s3] sm:$0xff]  ;;  %v239_v12 = vpack.c.bf16 %v43_v10, %v42_v9  ;;  %v44_v13 = vld [vmem:[#allocation2 + $0x30] sm:$0xff]  ;;  %v45_v14 = vld [vmem:[#allocation2 + $0x38] sm:$0xff] }
  0x16   :  { %234 = vmatpush3.bf16.msra.mxu0 %v233_v6  ;;  %129 = vperm.xlu0 %263, %v126_v11   ;;  %v242_v15 = vpack.c.bf16 %v45_v14, %v44_v13  ;;  %v46_v16 = vld [vmem:[#allocation2 + $0x40] sm:$0xff]  ;;  %v47_v17 = vld [vmem:[#allocation2 + $0x48] sm:$0xff]  ;;  %v48_v19 = vld [vmem:[#allocation2 + $0x50] sm:$0xff] }
  0x17   :  { %235 = vmatprep.subr.bf16.mxu0 %v295_v0  ;;  %v245_v18 = vpack.c.bf16 %v47_v17, %v46_v16  ;;  %v49_v20 = vld [vmem:[#allocation2 + $0x58] sm:$0xff]  ;;  %v50_v22 = vld [vmem:[#allocation2 + $0x60] sm:$0xff]  ;;  %v51_v23 = vld [vmem:[#allocation2 + $0x68] sm:$0xff] }
  0x18   :  { %v248_v21 = vpack.c.bf16 %v49_v20, %v48_v19  ;;  %v251_v24 = vpack.c.bf16 %v51_v23, %v50_v22  ;;  %v52_v25 = vld [vmem:[#allocation2 + $0x70] sm:$0xff]  ;;  %v53_v26 = vld [vmem:[#allocation2 + $0x78] sm:$0xff]  ;;  %v37_v28 = vld [vmem:[%s364_s0] sm:$0xff] }
  0x19   :  { %v254_v27 = vpack.c.bf16 %v53_v26, %v52_v25  ;;  %v178_v29 = vld [vmem:[%s369_s5] ss:$0 sm:$0xff] }
  0x1a   :  { %237 = vmatpush3.bf16.msra.mxu0 %v236_v8  ;;  %v179_v32 = vld [vmem:[%s368_s4] ss:$0 sm:$0xff] }
  0x1b   :  { %238 = vmatprep.subr.bf16.mxu0 %v295_v0  ;;  %v124_v38 = vld [vmem:[%s366_s2] sm:$0xff] }
  0x1e   :  { %240 = vmatpush3.bf16.msra.mxu0 %v239_v12 }
  0x1f   :  { %241 = vmatprep.subr.bf16.mxu0 %v295_v0 }
  0x22   :  { %243 = vmatpush3.bf16.msra.mxu0 %v242_v15 }
  0x23   :  { %244 = vmatprep.subr.bf16.mxu0 %v295_v0 }
  0x26   :  { %246 = vmatpush3.bf16.msra.mxu0 %v245_v18 }
  0x27   :  { %247 = vmatprep.subr.bf16.mxu0 %v295_v0 }
  0x2a   :  { %249 = vmatpush3.bf16.msra.mxu0 %v248_v21 }
  0x2b   :  { %250 = vmatprep.subr.bf16.mxu0 %v295_v0 }
  0x2e   :  { %252 = vmatpush3.bf16.msra.mxu0 %v251_v24 }
  0x2f   :  { %253 = vmatprep.subr.bf16.mxu0 %v295_v0 }
  0x32   :  { %255 = vmatpush3.bf16.msra.mxu0 %v254_v27 }
  0x35   :  { %230 = vmatmul.mubr.f32.vlgmr.msra.gmra.mrb[0].mxu0 %v37_v28 }
  0x95   :  { %v130_v30 = vpop.permute.xlu0 %129 }
  0x96   :  { %vm135_vm1 = vcmp.eq.s32.totalorder %v130_v30, %v178_v29 }
 0x108   :  { %v120_v31 = vpop.f32.mrb[0].mxu0 }
 0x109   :  { %v136_v33 = vmul.f32 2.0, %v120_v31  ;;  %v231_v34 = vpop.f32.mrb[1].mxu0 }
 0x10b   :  { %v143_v35 = vsub.f32 %v179_v32, %v136_v33 }
 0x10d   :  { %v147_v36 = vsel %vm135_vm1, 1e+30, %v143_v35  ;;  %v144_v37 = vsel %vm135_vm1, %v143_v35, -1e+30 }
 0x10e   :  { %148 = vmin.xlane.f32.xlu1 %v147_v36  ;;  %145 = vmax.xlane.f32.xlu0 %v144_v37 }
 0x19b   :  { %v149_v39 = vpop.xlane.xlu1 %148  ;;  %v146_v40 = vpop.xlane.xlu0 %145 }
 0x19c   :  { %v159_v41 = vadd.f32 %v149_v39, %v124_v38  ;;  %v150_v42 = vadd.f32 %v146_v40, %v124_v38 }
 0x19e   :  { %v160_v43 = vmax.f32 %v159_v41, 1e-12  ;;  %v151_v44 = vmax.f32 %v150_v42, 1e-12 }
 0x1a0   :  { %264 = vrsqrt.f32 %v160_v43  ;;  %vm163_vm2 = vcmp.eq.f32.partialorder %v160_v43, inf  ;;  %v166_v48 = vand.u32 2147483648, %v160_v43  ;;  %vm165_vm3 = vcmp.eq.f32.partialorder %v160_v43, 0.0 }
 0x1a1   :  { %266 = vrsqrt.f32 %v151_v44  ;;  %vm154_vm4 = vcmp.eq.f32.partialorder %v151_v44, inf  ;;  %v157_v51 = vand.u32 2147483648, %v151_v44  ;;  %vm156_vm5 = vcmp.eq.f32.partialorder %v151_v44, 0.0 }
 0x1aa   :  { %v265_v45 = vpop.eup %264 }
 0x1ab   :  { %v267_v46 = vpop.eup %266  ;;  %v162_v47 = vmul.f32 %v265_v45, %v160_v43 }
 0x1ac   :  { %v153_v49 = vmul.f32 %v267_v46, %v151_v44 }
 0x1ad   :  { %v164_v50 = vsel %vm163_vm2, %v160_v43, %v162_v47 }
 0x1ae   :  { %v167_v52 = vsel %vm165_vm3, %v166_v48, %v164_v50  ;;  %v155_v53 = vsel %vm154_vm4, %v151_v44, %v153_v49 }
 0x1af   :  { %v158_v54 = vsel %vm156_vm5, %v157_v51, %v155_v53 }
 0x1b0   :  { %v168_v55 = vsub.f32 %v158_v54, %v167_v52 }
 0x1b2   :  { %v169_v56 = vadd.f32 0.3, %v168_v55 }
 0x1b4   :  { %v170_v57 = vmax.f32 %v169_v56, 0.0 }
 0x1b6   :  { %172 = vst.msk [vmem:[%s370_s6] sm:$0xff] %vm171_vm6, %v170_v57 }
 0x1b7   :  { %177 = vsyncpa [#allocation3], 1 }

</bundles_post_ra>
